<compile_context>
chip_gen: v7x
topology: tpu7x:2x2x1
jax: 0.10.0
libtpu: 0.0.40
codegen_flags: <defaults>
</compile_context>

<pallas_src>
import functools

import jax
import jax.numpy as jnp
from jax.experimental import pallas as pl
from jax.experimental.pallas import tpu as pltpu

EPS = 1e-6


def _round_up(x, m):
    return (x + m - 1) // m * m


def sublayer_connection_kernel(x_ref, gamma_ref, beta_ref, w_ref, b_ref, o_ref):
    x = x_ref[...].astype(jnp.float32)                      # (tm, D)
    d = x.shape[-1]

    # LayerNorm matching the PyTorch reference exactly:
    #   mean over last dim; torch.std is the UNBIASED std (divide by N-1);
    #   eps is added to std (not variance).
    mean = jnp.mean(x, axis=-1, keepdims=True)
    xc = x - mean
    var_unbiased = jnp.sum(xc * xc, axis=-1, keepdims=True) * jnp.float32(1.0 / (d - 1))
    std = jnp.sqrt(var_unbiased)
    # Reciprocal instead of per-element divide (off the VALU slot).
    inv = pl.reciprocal(std + EPS, approx=False)
    normed = gamma_ref[...].astype(jnp.float32) * xc * inv + beta_ref[...].astype(jnp.float32)

    # sublayer := Linear(d_model, d_model).  Feed the MXU operands in the weight
    # dtype (bf16 models -> bf16 MXU operands, f32 accumulate); f32 stays f32.
    if w_ref.dtype != jnp.float32:
        lhs = normed.astype(w_ref.dtype)
    else:
        lhs = normed
    y = jnp.dot(lhs, w_ref[...], preferred_element_type=jnp.float32)
    y = y + b_ref[...].astype(jnp.float32)

    # dropout (inference mode) == identity; residual add.
    o_ref[...] = (x + y).astype(o_ref.dtype)


@functools.partial(jax.jit, static_argnames=("tm",))
def sublayer_connection(x, gamma, beta, w, b, *, tm=512):
    """x: [B, S, D]; gamma/beta: [D]; w: [D, D]; b: [D]."""
    B, S, D = x.shape
    M = B * S
    x2 = x.reshape(M, D)

    # Row tiling: cap at `tm` rows per grid step, keep it a multiple of the
    # 8-sublane granule, and pad the row count so the grid covers all rows.
    tm = min(tm, _round_up(M, 8))
    M_pad = _round_up(M, tm)
    if M_pad != M:
        x2 = jnp.pad(x2, ((0, M_pad - M), (0, 0)))

    gamma2 = gamma.reshape(1, D)
    beta2 = beta.reshape(1, D)
    b2 = b.reshape(1, D)

    grid = (M_pad // tm,)

    x_isz = jnp.dtype(x.dtype).itemsize
    w_isz = jnp.dtype(w.dtype).itemsize
    # x block + out block double-buffered; w/gamma/beta/b single-buffered.
    vmem_bytes = 2 * 2 * tm * D * x_isz + D * D * w_isz + 3 * D * 4 + (2 << 20)
    vmem_bytes = int(min(max(vmem_bytes, 16 << 20), 48 << 20))  # headroom on v7x 64 MiB

    cost = pl.CostEstimate(
        flops=2 * M_pad * D * D + 10 * M_pad * D,
        transcendentals=2 * M_pad,
        bytes_accessed=2 * M_pad * D * x_isz + D * D * w_isz + 3 * D * 4,
    )

    out = pl.pallas_call(
        sublayer_connection_kernel,
        out_shape=jax.ShapeDtypeStruct((M_pad, D), x.dtype),
        grid_spec=pltpu.PrefetchScalarGridSpec(
            num_scalar_prefetch=0,
            grid=grid,
            in_specs=[
                # Streaming rows: default double-buffering pipelines DMA vs compute.
                pl.BlockSpec((tm, D), lambda i: (i, 0)),
                # Grid-invariant operands: single-buffered (never re-DMA'd).
                pl.BlockSpec((1, D), lambda i: (0, 0), pipeline_mode=pl.Buffered(1)),
                pl.BlockSpec((1, D), lambda i: (0, 0), pipeline_mode=pl.Buffered(1)),
                pl.BlockSpec((D, D), lambda i: (0, 0), pipeline_mode=pl.Buffered(1)),
                pl.BlockSpec((1, D), lambda i: (0, 0), pipeline_mode=pl.Buffered(1)),
            ],
            out_specs=pl.BlockSpec((tm, D), lambda i: (i, 0)),
        ),
        compiler_params=pltpu.CompilerParams(
            dimension_semantics=("parallel",),
            vmem_limit_bytes=vmem_bytes,
        ),
        cost_estimate=cost,
    )(x2, gamma2, beta2, w, b2)

    if M_pad != M:
        out = out[:M]
    return out.reshape(B, S, D)


def reference(x, gamma, beta, w, b):
    xf = x.astype(jnp.float32)
    d = xf.shape[-1]
    mean = jnp.mean(xf, axis=-1, keepdims=True)
    xc = xf - mean
    std = jnp.sqrt(jnp.sum(xc * xc, axis=-1, keepdims=True) / (d - 1))
    normed = gamma * xc / (std + EPS) + beta
    y = normed @ w.astype(jnp.float32) + b
    return (xf + y).astype(x.dtype)


if __name__ == "__main__":
    D = 128
    key = jax.random.PRNGKey(0)
    kx1, kx2, kw = jax.random.split(key, 3)

    # Deterministic parameter init (shapes from the module's __init__):
    gamma = jnp.ones((D,), dtype=jnp.float32)   # LayerNorm gamma
    beta = jnp.zeros((D,), dtype=jnp.float32)   # LayerNorm beta
    w = jax.random.normal(kw, (D, D), dtype=jnp.float32) * (1.0 / jnp.sqrt(D))
    b = jnp.zeros((D,), dtype=jnp.float32)

    # Case 1: small shape implied by the module (batch=2, seq=8, d_model=128).
    x1 = jax.random.normal(kx1, (2, 8, D), dtype=jnp.float32)
    out1 = sublayer_connection(x1, gamma, beta, w, b)
    jax.block_until_ready(out1)
    ref1 = reference(x1, gamma, beta, w, b)
    assert jnp.allclose(out1, ref1, atol=2e-4, rtol=2e-4), "mismatch vs reference (case 1)"

    # Case 2: exercises the tiled grid (multiple steps) and row-padding path.
    x2 = jax.random.normal(kx2, (4, 160, D), dtype=jnp.float32)   # M=640, tm=256 -> grid=3
    out2 = sublayer_connection(x2, gamma, beta, w, b, tm=256)
    jax.block_until_ready(out2)
    ref2 = reference(x2, gamma, beta, w, b)
    assert jnp.allclose(out2, ref2, atol=2e-4, rtol=2e-4), "mismatch vs reference (case 2)"

    print("KERNEL_OK")
</pallas_src>

<mosaic_0001>
module attributes {stable_mosaic.version = 11 : i64} {
  func.func @sublayer_connection_kernel(%arg0: i32, %arg1: memref<16x128xf32, #tpu.memory_space<vmem>>, %arg2: memref<1x128xf32, #tpu.memory_space<vmem>>, %arg3: memref<1x128xf32, #tpu.memory_space<vmem>>, %arg4: memref<128x128xf32, #tpu.memory_space<vmem>>, %arg5: memref<1x128xf32, #tpu.memory_space<vmem>>, %arg6: memref<16x128xf32, #tpu.memory_space<vmem>>) attributes {dimension_semantics = [#tpu.dimension_semantics<parallel>], iteration_bounds = array<i64: 1>, scalar_prefetch = 0 : i64, scratch_operands = 0 : i64, tpu.core_type = #tpu.core_type<tc>, window_params = [{transform_indices = @transform_0, window_bounds = array<i64: 16, 128>}, {pipeline_mode = #tpu.pipeline_mode<synchronous>, transform_indices = @transform_1, window_bounds = array<i64: 1, 128>}, {pipeline_mode = #tpu.pipeline_mode<synchronous>, transform_indices = @transform_2, window_bounds = array<i64: 1, 128>}, {pipeline_mode = #tpu.pipeline_mode<synchronous>, transform_indices = @transform_3, window_bounds = array<i64: 128, 128>}, {pipeline_mode = #tpu.pipeline_mode<synchronous>, transform_indices = @transform_4, window_bounds = array<i64: 1, 128>}, {transform_indices = @transform_5, window_bounds = array<i64: 16, 128>}]} {
    %c0 = arith.constant 0 : index
    %c0_0 = arith.constant 0 : index
    %0 = vector.load %arg1[%c0, %c0_0] : memref<16x128xf32, #tpu.memory_space<vmem>>, vector<16x128xf32>
    %cst = arith.constant dense<0.000000e+00> : vector<16xf32>
    %1 = vector.multi_reduction <add>, %0, %cst [1] : vector<16x128xf32> to vector<16xf32>
    %2 = vector.shape_cast %1 : vector<16xf32> to vector<16x1xf32>
    %cst_1 = arith.constant 1.280000e+02 : f32
    %3 = vector.broadcast %cst_1 : f32 to vector<16x1xf32>
    %4 = arith.divf %2, %3 : vector<16x1xf32>
    %5 = vector.broadcast %4 : vector<16x1xf32> to vector<16x128xf32>
    %6 = arith.subf %0, %5 : vector<16x128xf32>
    %7 = arith.mulf %6, %6 : vector<16x128xf32>
    %cst_2 = arith.constant dense<0.000000e+00> : vector<16xf32>
    %8 = vector.multi_reduction <add>, %7, %cst_2 [1] : vector<16x128xf32> to vector<16xf32>
    %9 = vector.shape_cast %8 : vector<16xf32> to vector<16x1xf32>
    %cst_3 = arith.constant 0.00787401571 : f32
    %10 = vector.broadcast %cst_3 : f32 to vector<16x1xf32>
    %11 = arith.mulf %9, %10 : vector<16x1xf32>
    %12 = math.sqrt %11 : vector<16x1xf32>
    %cst_4 = arith.constant 9.99999997E-7 : f32
    %13 = vector.broadcast %cst_4 : f32 to vector<16x1xf32>
    %14 = arith.addf %12, %13 : vector<16x1xf32>
    %15 = tpu.reciprocal %14 : vector<16x1xf32> -> vector<16x1xf32>
    %c0_5 = arith.constant 0 : index
    %c0_6 = arith.constant 0 : index
    %16 = vector.load %arg2[%c0_5, %c0_6] : memref<1x128xf32, #tpu.memory_space<vmem>>, vector<1x128xf32>
    %17 = vector.broadcast %16 : vector<1x128xf32> to vector<16x128xf32>
    %18 = arith.mulf %17, %6 : vector<16x128xf32>
    %19 = vector.broadcast %15 : vector<16x1xf32> to vector<16x128xf32>
    %20 = arith.mulf %18, %19 : vector<16x128xf32>
    %c0_7 = arith.constant 0 : index
    %c0_8 = arith.constant 0 : index
    %21 = vector.load %arg3[%c0_7, %c0_8] : memref<1x128xf32, #tpu.memory_space<vmem>>, vector<1x128xf32>
    %22 = vector.broadcast %21 : vector<1x128xf32> to vector<16x128xf32>
    %23 = arith.addf %20, %22 : vector<16x128xf32>
    %c0_9 = arith.constant 0 : index
    %c0_10 = arith.constant 0 : index
    %24 = vector.load %arg4[%c0_9, %c0_10] : memref<128x128xf32, #tpu.memory_space<vmem>>, vector<128x128xf32>
    %cst_11 = arith.constant dense<0.000000e+00> : vector<16x128xf32>
    %25 = tpu.matmul %23, %24, %cst_11 {dimension_numbers = #tpu.dot_dimension_numbers<[1], [0], [0], [1], [0, 0, 1, 1], [], []>} : vector<16x128xf32>, vector<128x128xf32>, vector<16x128xf32> -> vector<16x128xf32>
    %c0_12 = arith.constant 0 : index
    %c0_13 = arith.constant 0 : index
    %26 = vector.load %arg5[%c0_12, %c0_13] : memref<1x128xf32, #tpu.memory_space<vmem>>, vector<1x128xf32>
    %27 = vector.broadcast %26 : vector<1x128xf32> to vector<16x128xf32>
    %28 = arith.addf %25, %27 : vector<16x128xf32>
    %29 = arith.addf %0, %28 : vector<16x128xf32>
    %c0_14 = arith.constant 0 : index
    %c0_15 = arith.constant 0 : index
    %30 = vector.load %arg6[%c0_14, %c0_15] : memref<16x128xf32, #tpu.memory_space<vmem>>, vector<16x128xf32>
    tpu.vector_store %arg6[%c0_14, %c0_15], %29 {strides = array<i32>} : memref<16x128xf32, #tpu.memory_space<vmem>>, vector<16x128xf32>,
    return
  }
  func.func @transform_0(%arg0: i32) -> (i32, i32) {
    %c0_i32 = arith.constant 0 : i32
    %c0_i32_0 = arith.constant 0 : i32
    return %arg0, %c0_i32 : i32, i32
  }
  func.func @transform_1(%arg0: i32) -> (i32, i32) {
    %c0_i32 = arith.constant 0 : i32
    %c0_i32_0 = arith.constant 0 : i32
    %c0_i32_1 = arith.constant 0 : i32
    return %c0_i32, %c0_i32_0 : i32, i32
  }
  func.func @transform_2(%arg0: i32) -> (i32, i32) {
    %c0_i32 = arith.constant 0 : i32
    %c0_i32_0 = arith.constant 0 : i32
    %c0_i32_1 = arith.constant 0 : i32
    return %c0_i32, %c0_i32_0 : i32, i32
  }
  func.func @transform_3(%arg0: i32) -> (i32, i32) {
    %c0_i32 = arith.constant 0 : i32
    %c0_i32_0 = arith.constant 0 : i32
    %c0_i32_1 = arith.constant 0 : i32
    return %c0_i32, %c0_i32_0 : i32, i32
  }
  func.func @transform_4(%arg0: i32) -> (i32, i32) {
    %c0_i32 = arith.constant 0 : i32
    %c0_i32_0 = arith.constant 0 : i32
    %c0_i32_1 = arith.constant 0 : i32
    return %c0_i32, %c0_i32_0 : i32, i32
  }
  func.func @transform_5(%arg0: i32) -> (i32, i32) {
    %c0_i32 = arith.constant 0 : i32
    %c0_i32_0 = arith.constant 0 : i32
    return %arg0, %c0_i32 : i32, i32
  }
}

</mosaic_0001>

<bundles_post_ra>
// kernel: sublayer_connection.1
= control target key start
LH: loop header
LB: loop body
LE: loop exit
PB: predicated region body
PF: predicated region fallthrough
CT: control target
= control target key end

     0   :  { %10 = vsyncpa [#allocation3], 0  ;;  %s508_s0 = inlined_call_operand.hbm [shape: f32[16,128], index: 0, kind: input, shape index: {}]   ;;  %s509_s1 = inlined_call_operand.vmem [shape: f32[1,128], index: 1, kind: input, shape index: {}]   ;;  %s510_s2 = inlined_call_operand.vmem [shape: f32[1,128], index: 2, kind: input, shape index: {}]   ;;  %s511_s3 = inlined_call_operand.hbm [shape: f32[128,128], index: 3, kind: input, shape index: {}]   ;;  %s512_s4 = inlined_call_operand.vmem [shape: f32[1,128], index: 4, kind: input, shape index: {}]   ;;  %s513_s5 = inlined_call_operand.hbm [shape: f32[16,128], index: 5, kind: output, shape index: {}]  }
   0x1   :  { %11 = vsyncpa [#allocation6], 0 }
   0x2   :  { %12 = vsyncpa [#allocation4], 0  ;;  %s399_s18 = smov [#allocation2]   ;;  %s327_s22 = scalar_lea.hbm %s508_s0, 256 }
   0x3   :  { %s18_s19 = sshll.u32 %s399_s18, 4  ;;  %p328_p0 = scmp.ne.s32.totalorder %s508_s0, %s327_s22  ;;  %s19_s19 = int_to_ptr.vmem [resolvable:$true] %s18_s19 }
   0x4   :  { %p331_p1 = scmp.lt.u32.totalorder %s327_s22, %s508_s0 }
   0x6   :  { %p333_p2 = pnand %p331_p1, %p328_p0 }
   0x8   :  { %336 = shalt.err (!%p333_p2)
}
   0x9   :  { %s337_s27 = scalar_lea.vmem %s19_s19, 256  ;;  %p342_p4 = scmp.lt.s32.totalorder %s19_s19, %s19_s19 }
   0xa   :  { %p338_p3 = scmp.ne.s32.totalorder %s19_s19, %s337_s27  ;;  %p343_p5 = scmp.lt.s32.totalorder %s337_s27, %s337_s27 }
   0xc   :  { %p344_p6 = por %p343_p5, %p342_p4 }
   0xe   :  { %p345_p7 = pnand %p344_p6, %p338_p3 }
  0x10   :  { %348 = shalt.err (!%p345_p7)
}
  0x11   :  { %s400_s28 = smov 128   ;;  %s401_s29 = smov 8  }
  0x12   :  { %24 = dma.hbm_to_vmem [thread:$0]  %s508_s0, 256, %s19_s19, [#allocation3], %s400_s28, %s400_s28, %s401_s29  }
  0x13   :  { %s402_s7 = smov [#allocation5]   ;;  %s349_s11 = scalar_lea.hbm %s511_s3, 2048 }
  0x14   :  { %s34_s8 = sshll.u32 %s402_s7, 4  ;;  %p350_p8 = scmp.ne.s32.totalorder %s511_s3, %s349_s11  ;;  %s35_s8 = int_to_ptr.vmem [resolvable:$true] %s34_s8 }
  0x15   :  { %p353_p9 = scmp.lt.u32.totalorder %s349_s11, %s511_s3 }
  0x17   :  { %p355_p10 = pnand %p353_p9, %p350_p8 }
  0x19   :  { %358 = shalt.err (!%p355_p10)
}
  0x1a   :  { %s359_s16 = scalar_lea.vmem %s35_s8, 2048  ;;  %p364_p12 = scmp.lt.s32.totalorder %s35_s8, %s35_s8 }
  0x1b   :  { %p360_p11 = scmp.ne.s32.totalorder %s35_s8, %s359_s16  ;;  %p365_p13 = scmp.lt.s32.totalorder %s359_s16, %s359_s16 }
  0x1d   :  { %p366_p0 = por %p365_p13, %p364_p12 }
  0x1f   :  { %p367_p1 = pnand %p366_p0, %p360_p11 }
  0x21   :  { %370 = shalt.err (!%p367_p1)
}
  0x22   :  { %40 = dma.hbm_to_vmem [thread:$0]  %s511_s3, 2048, %s35_s8, [#allocation6], %s400_s28, %s400_s28, %s401_s29  }
  0x23   :  { %393 = dma.done.wait [#allocation3], 256  }
  0x24   :  { %394 = vsyncadd [#allocation3], 4294967040 }
  0x25   :  { %395 = dma.done.wait [#allocation6], 2048  }
  0x26   :  { %396 = vsyncadd [#allocation6], 4294965248  ;;  %v464_v0 = vld [vmem:[#allocation2] sm:$0xff]  ;;  %v467_v1 = vld [vmem:[#allocation2 + $0x8] sm:$0xff] }
  0x27   :  { %51 = vadd.xlane.f32.xlu0 %v464_v0  ;;  %v106_v10 = vld [vmem:[#allocation5] sm:$0xff]  ;;  %v107_v11 = vld [vmem:[#allocation5 + $0x8] sm:$0xff]  ;;  %v108_v13 = vld [vmem:[#allocation5 + $0x10] sm:$0xff] }
  0x28   :  { %v282_v12 = vpack.c.bf16 %v107_v11, %v106_v10  ;;  %v109_v14 = vld [vmem:[#allocation5 + $0x18] sm:$0xff]  ;;  %v110_v16 = vld [vmem:[#allocation5 + $0x20] sm:$0xff]  ;;  %v111_v17 = vld [vmem:[#allocation5 + $0x28] sm:$0xff] }
  0x29   :  { %v286_v15 = vpack.c.bf16 %v109_v14, %v108_v13  ;;  %v290_v18 = vpack.c.bf16 %v111_v17, %v110_v16  ;;  %v112_v19 = vld [vmem:[#allocation5 + $0x30] sm:$0xff]  ;;  %v113_v20 = vld [vmem:[#allocation5 + $0x38] sm:$0xff]  ;;  %v114_v22 = vld [vmem:[#allocation5 + $0x40] sm:$0xff] }
  0x2a   :  { %283 = vmatprep.subr.bf16.mxu0 %v282_v12  ;;  %v294_v21 = vpack.c.bf16 %v113_v20, %v112_v19  ;;  %v115_v23 = vld [vmem:[#allocation5 + $0x48] sm:$0xff]  ;;  %v116_v24 = vld [vmem:[#allocation5 + $0x50] sm:$0xff]  ;;  %v117_v26 = vld [vmem:[#allocation5 + $0x58] sm:$0xff] }
  0x2b   :  { %53 = vadd.xlane.f32.xlu0 %v467_v1  ;;  %285 = vmatpush3.bf16.msra.mxu0 %v282_v12  ;;  %v298_v25 = vpack.c.bf16 %v115_v23, %v114_v22  ;;  %v302_v27 = vpack.c.bf16 %v117_v26, %v116_v24  ;;  %v118_v28 = vld [vmem:[#allocation5 + $0x60] sm:$0xff]  ;;  %v119_v29 = vld [vmem:[#allocation5 + $0x68] sm:$0xff]  ;;  %v120_v31 = vld [vmem:[#allocation5 + $0x70] sm:$0xff] }
  0x2c   :  { %287 = vmatprep.subr.bf16.mxu0 %v286_v15  ;;  %v306_v30 = vpack.c.bf16 %v119_v29, %v118_v28  ;;  %v121_v32 = vld [vmem:[#allocation5 + $0x78] sm:$0xff]  ;;  %v226_v50 = vld [vmem:[%s509_s1] ss:$0 sm:$0xff]  ;;  %s403_s1 = smov [#allocation7]  }
  0x2d   :  { %v310_v33 = vpack.c.bf16 %v121_v32, %v120_v31  ;;  %v227_v53 = vld [vmem:[%s510_s2] ss:$0 sm:$0xff]  ;;  %s213_s23 = sshll.u32 %s403_s1, 4  ;;  %s214_s23 = int_to_ptr.vmem [resolvable:$true] %s213_s23 }
  0x2e   :  { %v228_v60 = vld [vmem:[%s512_s4] ss:$0 sm:$0xff]  ;;  %s371_s2 = scalar_lea.vmem %s214_s23, 256  ;;  %p376_p3 = scmp.lt.s32.totalorder %s214_s23, %s214_s23 }
  0x2f   :  { %289 = vmatpush3.bf16.msra.mxu0 %v286_v15  ;;  %p372_p2 = scmp.ne.s32.totalorder %s214_s23, %s371_s2  ;;  %p377_p4 = scmp.lt.s32.totalorder %s371_s2, %s371_s2 }
  0x30   :  { %291 = vmatprep.subr.bf16.mxu0 %v290_v18 }
  0x31   :  { %p378_p5 = por %p377_p4, %p376_p3 }
  0x33   :  { %293 = vmatpush3.bf16.msra.mxu0 %v290_v18  ;;  %p379_p6 = pnand %p378_p5, %p372_p2 }
  0x34   :  { %295 = vmatprep.subr.bf16.mxu0 %v294_v21 }
  0x37   :  { %297 = vmatpush3.bf16.msra.mxu0 %v294_v21 }
  0x38   :  { %299 = vmatprep.subr.bf16.mxu0 %v298_v25 }
  0x3b   :  { %301 = vmatpush3.bf16.msra.mxu0 %v298_v25 }
  0x3c   :  { %303 = vmatprep.subr.bf16.mxu0 %v302_v27 }
  0x3f   :  { %305 = vmatpush3.bf16.msra.mxu0 %v302_v27 }
  0x40   :  { %307 = vmatprep.subr.bf16.mxu0 %v306_v30 }
  0x43   :  { %309 = vmatpush3.bf16.msra.mxu0 %v306_v30 }
  0x44   :  { %311 = vmatprep.subr.bf16.mxu0 %v310_v33 }
  0x47   :  { %313 = vmatpush3.bf16.msra.mxu0 %v310_v33 }
  0xb4   :  { %v52_v2 = vpop.xlane.xlu0 %51 }
  0xb5   :  { %v56_v3 = vmul.f32 0.0078125, %v52_v2 }
  0xb7   :  { %v471_v4 = vsub.f32 %v464_v0, %v56_v3 }
  0xb8   :  { %v54_v5 = vpop.xlane.xlu0 %53 }
  0xb9   :  { %v57_v6 = vmul.f32 0.0078125, %v54_v5  ;;  %v60_v7 = vmul.f32 %v471_v4, %v471_v4  ;;  %v93_v51 = vmul.f32 %v226_v50, %v471_v4 }
  0xbb   :  { %v476_v8 = vsub.f32 %v467_v1, %v57_v6  ;;  %62 = vadd.xlane.f32.xlu1 %v60_v7 }
  0xbd   :  { %v61_v9 = vmul.f32 %v476_v8, %v476_v8  ;;  %v94_v55 = vmul.f32 %v226_v50, %v476_v8 }
  0xbf   :  { %64 = vadd.xlane.f32.xlu1 %v61_v9 }
 0x148   :  { %v63_v34 = vpop.xlane.xlu1 %62 }
 0x149   :  { %v66_v35 = vmul.f32 0.007874016, %v63_v34 }
 0x14b   :  { %319 = vrsqrt.f32 %v66_v35  ;;  %vm70_vm0 = vcmp.eq.f32.partialorder %v66_v35, inf  ;;  %v73_v40 = vand.u32 2147483648, %v66_v35  ;;  %vm72_vm1 = vcmp.eq.f32.partialorder %v66_v35, 0.0 }
 0x14c   :  { %v65_v36 = vpop.xlane.xlu1 %64 }
 0x14d   :  { %v67_v37 = vmul.f32 0.007874016, %v65_v36 }
 0x14f   :  { %321 = vrsqrt.f32 %v67_v37  ;;  %vm77_vm2 = vcmp.eq.f32.partialorder %v67_v37, inf  ;;  %v80_v46 = vand.u32 2147483648, %v67_v37  ;;  %vm79_vm3 = vcmp.eq.f32.partialorder %v67_v37, 0.0 }
 0x155   :  { %v320_v38 = vpop.eup %319 }
 0x156   :  { %v69_v39 = vmul.f32 %v320_v38, %v66_v35 }
 0x158   :  { %v71_v41 = vsel %vm70_vm0, %v66_v35, %v69_v39 }
 0x159   :  { %v322_v42 = vpop.eup %321  ;;  %v74_v43 = vsel %vm72_vm1, %v73_v40, %v71_v41 }
 0x15a   :  { %v76_v44 = vmul.f32 %v322_v42, %v67_v37  ;;  %v82_v45 = vadd.f32 1e-06, %v74_v43 }
 0x15c   :  { %v78_v47 = vsel %vm77_vm2, %v67_v37, %v76_v44  ;;  %323 = vrcp.f32 %v82_v45 }
 0x15d   :  { %v81_v48 = vsel %vm79_vm3, %v80_v46, %v78_v47 }
 0x15e   :  { %v83_v49 = vadd.f32 1e-06, %v81_v48 }
 0x160   :  { %325 = vrcp.f32 %v83_v49 }
 0x166   :  { %v324_v52 = vpop.eup %323 }
 0x167   :  { %v95_v54 = vmul.f32 %v324_v52, %v93_v51 }
 0x169   :  { %v104_v56 = vadd.f32 %v227_v53, %v95_v54 }
 0x16a   :  { %v326_v57 = vpop.eup %325 }
 0x16b   :  { %v96_v58 = vmul.f32 %v326_v57, %v94_v55  ;;  %279 = vmatprep.mubr.f32.mxu0 %v104_v56 }
 0x16d   :  { %v105_v59 = vadd.f32 %v227_v53, %v96_v58 }
 0x16f   :  { %280 = vmatmul.mubr.f32.vlgmr.msra.gmra.mrb[0].mxu0 %v105_v59 }
 0x242   :  { %v281_v61 = vpop.f32.mrb[0].mxu0 }
 0x243   :  { %v201_v62 = vadd.f32 %v281_v61, %v228_v60  ;;  %v195_v63 = vpop.f32.mrb[1].mxu0 }
 0x244   :  { %v196_v2 = vadd.f32 %v228_v60, %v195_v63 }
 0x245   :  { %v205_v3 = vadd.f32 %v201_v62, %v467_v1 }
 0x246   :  { %v204_v4 = vadd.f32 %v196_v2, %v464_v0 }
 0x247   :  { %207 = vst [vmem:[#allocation7 + $0x8] sm:$0xff] %v205_v3 }
 0x248   :  { %206 = vst [vmem:[#allocation7] sm:$0xff] %v204_v4 }
 0x249   :  { %382 = shalt.err (!%p379_p6)
}
 0x24a   :  { %s383_s25 = scalar_lea.hbm %s513_s5, 256 }
 0x24b   :  { %p384_p7 = scmp.ne.s32.totalorder %s513_s5, %s383_s25  ;;  %p387_p8 = scmp.lt.u32.totalorder %s383_s25, %s513_s5 }
 0x24d   :  { %p389_p9 = pnand %p387_p8, %p384_p7 }
 0x24f   :  { %392 = shalt.err (!%p389_p9)
}
 0x250   :  { %219 = dma.vmem_to_hbm [thread:$0]  %s214_s23, 256, %s513_s5, [#allocation4], %s400_s28, %s400_s28, %s401_s29  }
 0x251   :  { %397 = dma.done.wait [#allocation4], 256  }
 0x252   :  { %398 = vsyncadd [#allocation4], 4294967040 }
 0x253   :  { %223 = vsyncpa [#allocation3], 1 }
 0x254   :  { %224 = vsyncpa [#allocation6], 1 }
 0x255   :  { %225 = vsyncpa [#allocation4], 1 }

</bundles_post_ra>
